<compile_context>
chip_gen: v7x
topology: tpu7x:2x2x1
jax: 0.10.0
libtpu: 0.0.40
codegen_flags: <defaults>
</compile_context>

<pallas_src>
import jax
import jax.numpy as jnp
from jax.experimental import pallas as pl
from jax.experimental.pallas import tpu as pltpu

KSIZE = 7
PAD = 3


def _conv_kernel(x_ref, t_ref, b_ref, o_ref):
    # x_ref: (NB, H, W*Cin)      activations for NB images, lanes = W*Cin
    # t_ref: (7*W*Cin, W*Cout)   K-stacked banded (Toeplitz) weights, bf16
    # b_ref: (1, W*Cout)         bias tiled across W (lane layout w*Cout + co), f32
    # o_ref: (NB, H, W*Cout)     lane-dense output (unmasked 128-lane stores)
    nb, H, wcin = x_ref.shape
    compute_dtype = t_ref.dtype

    # Assemble the K-stacked LHS in registers.  Column block kh holds the
    # height-shifted (and zero height-padded) rows for tap kh, so the zero
    # padding is created here instead of via a staged VMEM buffer.
    lhs_parts = []
    for i in range(nb):
        x_img = x_ref[i]                                          # (H, W*Cin)
        cols = []
        for kh in range(KSIZE):
            shift = kh - PAD                       # input row = output row + shift
            if shift < 0:
                col = jnp.concatenate(
                    [jnp.zeros((-shift, wcin), x_img.dtype), x_img[:H + shift, :]],
                    axis=0)
            elif shift > 0:
                col = jnp.concatenate(
                    [x_img[shift:, :], jnp.zeros((shift, wcin), x_img.dtype)],
                    axis=0)
            else:
                col = x_img
            cols.append(col)
        lhs_parts.append(jnp.concatenate(cols, axis=-1))          # (H, 7*W*Cin)
    lhs = jnp.concatenate(lhs_parts, axis=0)                      # (NB*H, 7*W*Cin)

    # Single MXU matmul (K = 7*W*Cin), f32 accumulation in vregs.
    acc = jnp.dot(lhs.astype(compute_dtype), t_ref[...],
                  preferred_element_type=jnp.float32)             # (NB*H, W*Cout)
    out = (acc + b_ref[...].astype(jnp.float32)).astype(o_ref.dtype)

    for i in range(nb):
        o_ref[i] = out[i * H:(i + 1) * H, :]        # unmasked lane-dense stores


def _build_banded_weights(w_hwio, width):
    """T[kh, w_in*Cin + ci, w_out*Cout + co] = w[kh, w_in - w_out + PAD, ci, co]
    (zero outside the 7-wide band): the kw taps and width zero-padding of a
    stride-1 / pad-3 conv expressed as one (W*Cin, W*Cout) matmul per kh."""
    ksize, _, cin, cout = w_hwio.shape
    w_in = jnp.arange(width)[:, None]                 # input column index
    w_out = jnp.arange(width)[None, :]                # output column index
    kw = w_in - w_out + PAD                           # (W, W)
    valid = (kw >= 0) & (kw < ksize)
    kw_c = jnp.clip(kw, 0, ksize - 1)
    blocks = w_hwio[:, kw_c]                          # (K, W, W, Cin, Cout)
    blocks = blocks * valid[None, :, :, None, None].astype(w_hwio.dtype)
    # (K, w_in, w_out, ci, co) -> (K, w_in, ci, w_out, co) -> (K, W*Cin, W*Cout)
    return blocks.transpose(0, 1, 3, 2, 4).reshape(ksize, width * cin, width * cout)


def conv_block_init(w_oihw, bias, width, compute_dtype=jnp.bfloat16):
    """Build the K-stacked banded weight and lane-tiled bias ONCE (hoisted out
    of the per-call forward path)."""
    cout, cin, kh, kw = w_oihw.shape
    assert kh == KSIZE and kw == KSIZE
    w_hwio = jnp.transpose(w_oihw, (2, 3, 1, 0))            # (7, 7, Cin, Cout)
    t = _build_banded_weights(w_hwio, width)                # (7, W*Cin, W*Cout)
    t_full = t.reshape(KSIZE * width * cin, width * cout).astype(compute_dtype)
    bias_lanes = jnp.tile(bias, width).reshape(1, width * cout).astype(jnp.float32)
    return t_full, bias_lanes


def _pick_block_n(n):
    # Batch NB images per grid step to amortize per-step overhead (v5e/v6e have
    # a single TensorCore).  On dual-TC v7x with large N, pass block_n=N//2.
    for cand in (8, 4, 2, 1):
        if n % cand == 0:
            return min(cand, n)
    return 1


def conv_block_apply_nhwc(x_nhwc, t_full, bias_lanes, cout, block_n=None):
    """x_nhwc: (N, H, W, Cin). Returns (N, H, W, Cout)."""
    N, H, W, Cin = x_nhwc.shape
    wcin = W * Cin
    wcout = W * cout
    if block_n is None:
        block_n = _pick_block_n(N)
    assert N % block_n == 0

    x2d = x_nhwc.reshape(N, H, wcin)                        # metadata-only reshape

    out = pl.pallas_call(
        _conv_kernel,
        out_shape=jax.ShapeDtypeStruct((N, H, wcout), x_nhwc.dtype),
        grid_spec=pltpu.PrefetchScalarGridSpec(
            num_scalar_prefetch=0,
            grid=(N // block_n,),
            in_specs=[
                pl.BlockSpec((block_n, H, wcin), lambda n: (n, 0, 0)),
                # Constant index_map -> weight block stays resident across steps.
                pl.BlockSpec((KSIZE * wcin, wcout), lambda n: (0, 0)),
                pl.BlockSpec((1, wcout), lambda n: (0, 0)),
            ],
            out_specs=pl.BlockSpec((block_n, H, wcout), lambda n: (n, 0, 0)),
        ),
        compiler_params=pltpu.CompilerParams(
            dimension_semantics=("parallel",)),
    )(x2d, t_full, bias_lanes)

    return out.reshape(N, H, W, cout)                       # metadata-only reshape


def conv_block_nchw(x_nchw, t_full, bias_lanes, cout, block_n=None):
    """Matches ConvBlock.forward: NCHW in, NCHW out (nn.Conv2d k=7, pad=3)."""
    x_nhwc = jnp.transpose(x_nchw, (0, 2, 3, 1))
    y_nhwc = conv_block_apply_nhwc(x_nhwc, t_full, bias_lanes, cout, block_n)
    return jnp.transpose(y_nhwc, (0, 3, 1, 2))


if __name__ == "__main__":
    key = jax.random.PRNGKey(0)
    kx, kw_key, kb = jax.random.split(key, 3)

    N, Cin, Cout, H, W = 2, 4, 8, 16, 16

    x = jax.random.normal(kx, (N, Cin, H, W), jnp.float32)
    # Deterministic parameter init (same shapes as nn.Conv2d(in_c, outc, 7)).
    fan_in = Cin * KSIZE * KSIZE
    bound = 1.0 / (fan_in ** 0.5)
    w = jax.random.uniform(kw_key, (Cout, Cin, KSIZE, KSIZE), jnp.float32,
                           minval=-bound, maxval=bound)
    b = jax.random.uniform(kb, (Cout,), jnp.float32, minval=-bound, maxval=bound)

    # Hoisted, one-time parameter preparation (banded weight in bf16).
    t_full, bias_lanes = conv_block_init(w, b, W, compute_dtype=jnp.bfloat16)

    y = conv_block_nchw(x, t_full, bias_lanes, Cout)
    y = jax.block_until_ready(y)

    # Reference: XLA f32 conv (same semantics as nn.Conv2d, pad=3, stride=1).
    y_ref = jax.lax.conv_general_dilated(
        x, w, window_strides=(1, 1), padding=((PAD, PAD), (PAD, PAD)),
        dimension_numbers=("NCHW", "OIHW", "NCHW")) + b.reshape(1, Cout, 1, 1)

    assert y.shape == (N, Cout, H, W)
    # bf16 weights/LHS with f32 accumulation -> relaxed tolerance vs f32 reference.
    assert jnp.allclose(y, y_ref, atol=3e-2, rtol=3e-2), float(
        jnp.max(jnp.abs(y - y_ref)))

    print("KERNEL_OK")
</pallas_src>

<mosaic_0001>
module attributes {stable_mosaic.version = 11 : i64} {
  func.func @_conv_kernel(%arg0: i32, %arg1: memref<2x16x64xf32, #tpu.memory_space<vmem>>, %arg2: memref<448x128xbf16, #tpu.memory_space<vmem>>, %arg3: memref<1x128xf32, #tpu.memory_space<vmem>>, %arg4: memref<2x16x128xf32, #tpu.memory_space<vmem>>) attributes {dimension_semantics = [#tpu.dimension_semantics<parallel>], iteration_bounds = array<i64: 1>, scalar_prefetch = 0 : i64, scratch_operands = 0 : i64, tpu.core_type = #tpu.core_type<tc>, window_params = [{transform_indices = @transform_0, window_bounds = array<i64: 2, 16, 64>}, {pipeline_mode = #tpu.pipeline_mode<synchronous>, transform_indices = @transform_1, window_bounds = array<i64: 448, 128>}, {pipeline_mode = #tpu.pipeline_mode<synchronous>, transform_indices = @transform_2, window_bounds = array<i64: 1, 128>}, {transform_indices = @transform_3, window_bounds = array<i64: 2, 16, 128>}]} {
    %c0 = arith.constant 0 : index
    %c0_0 = arith.constant 0 : index
    %c0_1 = arith.constant 0 : index
    %0 = vector.load %arg1[%c0, %c0_0, %c0_1] : memref<2x16x64xf32, #tpu.memory_space<vmem>>, vector<1x16x64xf32>
    %1 = vector.shape_cast %0 : vector<1x16x64xf32> to vector<16x64xf32>
    %cst = arith.constant 0.000000e+00 : f32
    %2 = vector.broadcast %cst : f32 to vector<3x64xf32>
    %3 = vector.extract_strided_slice %1 {offsets = [0, 0], sizes = [13, 64], strides = [1, 1]} : vector<16x64xf32> to vector<13x64xf32>
    %4 = tpu.concatenate %2, %3 in 0 : vector<3x64xf32>, vector<13x64xf32> -> vector<16x64xf32>
    %cst_2 = arith.constant 0.000000e+00 : f32
    %5 = vector.broadcast %cst_2 : f32 to vector<2x64xf32>
    %6 = vector.extract_strided_slice %1 {offsets = [0, 0], sizes = [14, 64], strides = [1, 1]} : vector<16x64xf32> to vector<14x64xf32>
    %7 = tpu.concatenate %5, %6 in 0 : vector<2x64xf32>, vector<14x64xf32> -> vector<16x64xf32>
    %cst_3 = arith.constant 0.000000e+00 : f32
    %8 = vector.broadcast %cst_3 : f32 to vector<1x64xf32>
    %9 = vector.extract_strided_slice %1 {offsets = [0, 0], sizes = [15, 64], strides = [1, 1]} : vector<16x64xf32> to vector<15x64xf32>
    %10 = tpu.concatenate %8, %9 in 0 : vector<1x64xf32>, vector<15x64xf32> -> vector<16x64xf32>
    %11 = vector.extract_strided_slice %1 {offsets = [1, 0], sizes = [15, 64], strides = [1, 1]} : vector<16x64xf32> to vector<15x64xf32>
    %cst_4 = arith.constant 0.000000e+00 : f32
    %12 = vector.broadcast %cst_4 : f32 to vector<1x64xf32>
    %13 = tpu.concatenate %11, %12 in 0 : vector<15x64xf32>, vector<1x64xf32> -> vector<16x64xf32>
    %14 = vector.extract_strided_slice %1 {offsets = [2, 0], sizes = [14, 64], strides = [1, 1]} : vector<16x64xf32> to vector<14x64xf32>
    %cst_5 = arith.constant 0.000000e+00 : f32
    %15 = vector.broadcast %cst_5 : f32 to vector<2x64xf32>
    %16 = tpu.concatenate %14, %15 in 0 : vector<14x64xf32>, vector<2x64xf32> -> vector<16x64xf32>
    %17 = vector.extract_strided_slice %1 {offsets = [3, 0], sizes = [13, 64], strides = [1, 1]} : vector<16x64xf32> to vector<13x64xf32>
    %cst_6 = arith.constant 0.000000e+00 : f32
    %18 = vector.broadcast %cst_6 : f32 to vector<3x64xf32>
    %19 = tpu.concatenate %17, %18 in 0 : vector<13x64xf32>, vector<3x64xf32> -> vector<16x64xf32>
    %20 = tpu.concatenate %4, %7, %10, %1, %13, %16, %19 in 1 : vector<16x64xf32>, vector<16x64xf32>, vector<16x64xf32>, vector<16x64xf32>, vector<16x64xf32>, vector<16x64xf32>, vector<16x64xf32> -> vector<16x448xf32>
    %c1 = arith.constant 1 : index
    %c0_7 = arith.constant 0 : index
    %c0_8 = arith.constant 0 : index
    %21 = vector.load %arg1[%c1, %c0_7, %c0_8] : memref<2x16x64xf32, #tpu.memory_space<vmem>>, vector<1x16x64xf32>
    %22 = vector.shape_cast %21 : vector<1x16x64xf32> to vector<16x64xf32>
    %cst_9 = arith.constant 0.000000e+00 : f32
    %23 = vector.broadcast %cst_9 : f32 to vector<3x64xf32>
    %24 = vector.extract_strided_slice %22 {offsets = [0, 0], sizes = [13, 64], strides = [1, 1]} : vector<16x64xf32> to vector<13x64xf32>
    %25 = tpu.concatenate %23, %24 in 0 : vector<3x64xf32>, vector<13x64xf32> -> vector<16x64xf32>
    %cst_10 = arith.constant 0.000000e+00 : f32
    %26 = vector.broadcast %cst_10 : f32 to vector<2x64xf32>
    %27 = vector.extract_strided_slice %22 {offsets = [0, 0], sizes = [14, 64], strides = [1, 1]} : vector<16x64xf32> to vector<14x64xf32>
    %28 = tpu.concatenate %26, %27 in 0 : vector<2x64xf32>, vector<14x64xf32> -> vector<16x64xf32>
    %cst_11 = arith.constant 0.000000e+00 : f32
    %29 = vector.broadcast %cst_11 : f32 to vector<1x64xf32>
    %30 = vector.extract_strided_slice %22 {offsets = [0, 0], sizes = [15, 64], strides = [1, 1]} : vector<16x64xf32> to vector<15x64xf32>
    %31 = tpu.concatenate %29, %30 in 0 : vector<1x64xf32>, vector<15x64xf32> -> vector<16x64xf32>
    %32 = vector.extract_strided_slice %22 {offsets = [1, 0], sizes = [15, 64], strides = [1, 1]} : vector<16x64xf32> to vector<15x64xf32>
    %cst_12 = arith.constant 0.000000e+00 : f32
    %33 = vector.broadcast %cst_12 : f32 to vector<1x64xf32>
    %34 = tpu.concatenate %32, %33 in 0 : vector<15x64xf32>, vector<1x64xf32> -> vector<16x64xf32>
    %35 = vector.extract_strided_slice %22 {offsets = [2, 0], sizes = [14, 64], strides = [1, 1]} : vector<16x64xf32> to vector<14x64xf32>
    %cst_13 = arith.constant 0.000000e+00 : f32
    %36 = vector.broadcast %cst_13 : f32 to vector<2x64xf32>
    %37 = tpu.concatenate %35, %36 in 0 : vector<14x64xf32>, vector<2x64xf32> -> vector<16x64xf32>
    %38 = vector.extract_strided_slice %22 {offsets = [3, 0], sizes = [13, 64], strides = [1, 1]} : vector<16x64xf32> to vector<13x64xf32>
    %cst_14 = arith.constant 0.000000e+00 : f32
    %39 = vector.broadcast %cst_14 : f32 to vector<3x64xf32>
    %40 = tpu.concatenate %38, %39 in 0 : vector<13x64xf32>, vector<3x64xf32> -> vector<16x64xf32>
    %41 = tpu.concatenate %25, %28, %31, %22, %34, %37, %40 in 1 : vector<16x64xf32>, vector<16x64xf32>, vector<16x64xf32>, vector<16x64xf32>, vector<16x64xf32>, vector<16x64xf32>, vector<16x64xf32> -> vector<16x448xf32>
    %42 = tpu.concatenate %20, %41 in 0 : vector<16x448xf32>, vector<16x448xf32> -> vector<32x448xf32>
    %43 = arith.truncf %42 : vector<32x448xf32> to vector<32x448xbf16>
    %c0_15 = arith.constant 0 : index
    %c0_16 = arith.constant 0 : index
    %44 = vector.load %arg2[%c0_15, %c0_16] : memref<448x128xbf16, #tpu.memory_space<vmem>>, vector<448x128xbf16>
    %cst_17 = arith.constant dense<0.000000e+00> : vector<32x128xf32>
    %45 = tpu.matmul %43, %44, %cst_17 {dimension_numbers = #tpu.dot_dimension_numbers<[1], [0], [0], [1], [0, 0, 1, 1], [], []>} : vector<32x448xbf16>, vector<448x128xbf16>, vector<32x128xf32> -> vector<32x128xf32>
    %c0_18 = arith.constant 0 : index
    %c0_19 = arith.constant 0 : index
    %46 = vector.load %arg3[%c0_18, %c0_19] : memref<1x128xf32, #tpu.memory_space<vmem>>, vector<1x128xf32>
    %47 = vector.broadcast %46 : vector<1x128xf32> to vector<32x128xf32>
    %48 = arith.addf %45, %47 : vector<32x128xf32>
    %49 = vector.extract_strided_slice %48 {offsets = [0, 0], sizes = [16, 128], strides = [1, 1]} : vector<32x128xf32> to vector<16x128xf32>
    %c0_20 = arith.constant 0 : index
    %c0_21 = arith.constant 0 : index
    %c0_22 = arith.constant 0 : index
    %50 = vector.load %arg4[%c0_20, %c0_21, %c0_22] : memref<2x16x128xf32, #tpu.memory_space<vmem>>, vector<1x16x128xf32>
    %51 = vector.shape_cast %50 : vector<1x16x128xf32> to vector<16x128xf32>
    %52 = vector.shape_cast %49 : vector<16x128xf32> to vector<1x16x128xf32>
    tpu.vector_store %arg4[%c0_20, %c0_21, %c0_22], %52 {strides = array<i32>} : memref<2x16x128xf32, #tpu.memory_space<vmem>>, vector<1x16x128xf32>,
    %53 = vector.extract_strided_slice %48 {offsets = [16, 0], sizes = [16, 128], strides = [1, 1]} : vector<32x128xf32> to vector<16x128xf32>
    %c1_23 = arith.constant 1 : index
    %c0_24 = arith.constant 0 : index
    %c0_25 = arith.constant 0 : index
    %54 = vector.load %arg4[%c1_23, %c0_24, %c0_25] : memref<2x16x128xf32, #tpu.memory_space<vmem>>, vector<1x16x128xf32>
    %55 = vector.shape_cast %54 : vector<1x16x128xf32> to vector<16x128xf32>
    %56 = vector.shape_cast %53 : vector<16x128xf32> to vector<1x16x128xf32>
    tpu.vector_store %arg4[%c1_23, %c0_24, %c0_25], %56 {strides = array<i32>} : memref<2x16x128xf32, #tpu.memory_space<vmem>>, vector<1x16x128xf32>,
    return
  }
  func.func @transform_0(%arg0: i32) -> (i32, i32, i32) {
    %c0_i32 = arith.constant 0 : i32
    %c0_i32_0 = arith.constant 0 : i32
    %c0_i32_1 = arith.constant 0 : i32
    return %arg0, %c0_i32, %c0_i32_0 : i32, i32, i32
  }
  func.func @transform_1(%arg0: i32) -> (i32, i32) {
    %c0_i32 = arith.constant 0 : i32
    %c0_i32_0 = arith.constant 0 : i32
    %c0_i32_1 = arith.constant 0 : i32
    return %c0_i32, %c0_i32_0 : i32, i32
  }
  func.func @transform_2(%arg0: i32) -> (i32, i32) {
    %c0_i32 = arith.constant 0 : i32
    %c0_i32_0 = arith.constant 0 : i32
    %c0_i32_1 = arith.constant 0 : i32
    return %c0_i32, %c0_i32_0 : i32, i32
  }
  func.func @transform_3(%arg0: i32) -> (i32, i32, i32) {
    %c0_i32 = arith.constant 0 : i32
    %c0_i32_0 = arith.constant 0 : i32
    %c0_i32_1 = arith.constant 0 : i32
    return %arg0, %c0_i32, %c0_i32_0 : i32, i32, i32
  }
}

</mosaic_0001>

<bundles_post_ra>
// kernel: tpu_custom_call.1
= control target key start
LH: loop header
LB: loop body
LE: loop exit
PB: predicated region body
PF: predicated region fallthrough
CT: control target
= control target key end

     0   :  { %8 = vsyncpa [#allocation3], 0  ;;  %s945_s0 = inlined_call_operand.hbm [shape: f32[2,16,64], index: 0, kind: input, shape index: {}]   ;;  %s946_s1 = inlined_call_operand.hbm [shape: bf16[448,128], index: 1, kind: input, shape index: {}]   ;;  %s947_s2 = inlined_call_operand.vmem [shape: f32[1,128], index: 2, kind: input, shape index: {}]   ;;  %s948_s3 = inlined_call_operand.hbm [shape: f32[2,16,128], index: 3, kind: output, shape index: {}]  }
   0x1   :  { %9 = vsyncpa [#allocation6], 0 }
   0x2   :  { %10 = vsyncpa [#allocation4], 0  ;;  %s743_s12 = smov [#allocation2]   ;;  %s671_s16 = scalar_lea.hbm %s945_s0, 512 }
   0x3   :  { %s16_s13 = sshll.u32 %s743_s12, 4  ;;  %p672_p0 = scmp.ne.s32.totalorder %s945_s0, %s671_s16  ;;  %s17_s13 = int_to_ptr.vmem [resolvable:$true] %s16_s13 }
   0x4   :  { %p675_p1 = scmp.lt.u32.totalorder %s671_s16, %s945_s0 }
   0x6   :  { %p677_p2 = pnand %p675_p1, %p672_p0 }
   0x8   :  { %680 = shalt.err (!%p677_p2)
}
   0x9   :  { %s681_s21 = scalar_lea.vmem %s17_s13, 512  ;;  %p686_p4 = scmp.lt.s32.totalorder %s17_s13, %s17_s13 }
   0xa   :  { %p682_p3 = scmp.ne.s32.totalorder %s17_s13, %s681_s21  ;;  %p687_p5 = scmp.lt.s32.totalorder %s681_s21, %s681_s21 }
   0xc   :  { %p688_p6 = por %p687_p5, %p686_p4 }
   0xe   :  { %p689_p7 = pnand %p688_p6, %p682_p3 }
  0x10   :  { %692 = shalt.err (!%p689_p7)
}
  0x11   :  { %s744_s22 = smov 128   ;;  %s745_s23 = smov 8  }
  0x12   :  { %22 = dma.hbm_to_vmem [thread:$0]  %s945_s0, 512, %s17_s13, [#allocation3], %s744_s22, %s744_s22, %s745_s23  }
  0x13   :  { %s746_s26 = smov [#allocation5]   ;;  %s693_s30 = scalar_lea.hbm %s946_s1, 3584 }
  0x14   :  { %s28_s27 = sshll.u32 %s746_s26, 4  ;;  %p694_p8 = scmp.ne.s32.totalorder %s946_s1, %s693_s30  ;;  %s29_s27 = int_to_ptr.vmem [resolvable:$true] %s28_s27 }
  0x15   :  { %p697_p9 = scmp.lt.u32.totalorder %s693_s30, %s946_s1 }
  0x17   :  { %p699_p10 = pnand %p697_p9, %p694_p8 }
  0x19   :  { %702 = shalt.err (!%p699_p10)
}
  0x1a   :  { %s703_s8 = scalar_lea.vmem %s29_s27, 3584  ;;  %p708_p12 = scmp.lt.s32.totalorder %s29_s27, %s29_s27 }
  0x1b   :  { %p704_p11 = scmp.ne.s32.totalorder %s29_s27, %s703_s8  ;;  %p709_p13 = scmp.lt.s32.totalorder %s703_s8, %s703_s8 }
  0x1d   :  { %p710_p0 = por %p709_p13, %p708_p12 }
  0x1f   :  { %p711_p1 = pnand %p710_p0, %p704_p11 }
  0x21   :  { %714 = shalt.err (!%p711_p1)
}
  0x22   :  { %s747_s0 = smov 64   ;;  %s748_s9 = smov 4  }
  0x23   :  { %34 = dma.hbm_to_vmem [thread:$0]  %s946_s1, 3584, %s29_s27, [#allocation6], %s747_s0, %s747_s0, %s748_s9  }
  0x24   :  { %737 = dma.done.wait [#allocation3], 512  }
  0x25   :  { %738 = vsyncadd [#allocation3], 4294966784 }
  0x26   :  { %739 = dma.done.wait [#allocation6], 3584  }
  0x27   :  { %740 = vsyncadd [#allocation6], 4294963712  ;;  %v749_v0 = vmov 0   ;;  %v801_v1 = vld [vmem:[#allocation2] sm:$0xff]  ;;  %v803_v2 = vld [vmem:[#allocation2 + $0x8] sm:$0xff]  ;;  %vm75_vm0 = vcmask 1045504  }
  0x28   :  { %474 = vmatprep.subr.bf16.mxu1 %v749_v0  ;;  %vm55_vm1 = vcmask 1041408   ;;  %v805_v3 = vld [vmem:[#allocation2 + $0x10] sm:$0xff]  ;;  %v613_v4 = vpack.i.bf16 %v803_v2, %v801_v1  ;;  %v76_v5 = vrot.slane %v801_v1, 2  ;;  %v77_v6 = vrot.slane %v803_v2, 2  ;;  %v812_v8 = vld [vmem:[#allocation2 + $0x18] sm:$0xff]  ;;  %v643_v12 = vld [vmem:[#allocation5 + $0x80] sm:$0xff]  }
  0x29   :  { %v56_v7 = vrot.slane %v801_v1, 6  ;;  %v57_v9 = vrot.slane %v803_v2, 6  ;;  %v126_v10 = vrot.slane %v805_v3, 6  ;;  %v127_v11 = vrot.slane %v812_v8, 6  ;;  %475 = vmatpush1.bf16.msra.mxu1 %v643_v12  ;;  %v644_v21 = vld [vmem:[#allocation5 + $0x88] sm:$0xff]   ;;  %v645_v25 = vld [vmem:[#allocation5 + $0x90] sm:$0xff]  }
  0x2a   :  { %614 = vrot.lane.b32.xlu0 %v613_v4, %s747_s0  ;;  %v78_v13 = vsel %vm75_vm0, %v76_v5, %v77_v6  ;;  %v80_v14 = vsel %vm75_vm0, %v77_v6, 0.0  ;;  %v143_v16 = vrot.slane %v805_v3, 2  ;;  %v144_v23 = vrot.slane %v812_v8, 2  ;;  %476 = vmatprep.subr.bf16.mxu1 %v749_v0  ;;  %v647_v29 = vld [vmem:[#allocation5 + $0x40] sm:$0xff]   ;;  %v650_v34 = vld [vmem:[#allocation5 + $0x48] sm:$0xff]   ;;  %v646_v38 = vld [vmem:[#allocation5 + $0x98] sm:$0xff]  }
  0x2b   :  { %v60_v15 = vsel %vm55_vm1, 0.0, %v56_v7  ;;  %v623_v17 = vpack.i.bf16 %v80_v14, %v78_v13  ;;  %v58_v18 = vsel %vm55_vm1, %v56_v7, %v57_v9  ;;  %v128_v19 = vsel %vm55_vm1, %v126_v10, %v127_v11  ;;  %v648_v30 = vld [vmem:[#allocation5] sm:$0xff]   ;;  %577 = vmatprep.subr.bf16.mxu0 %v647_v29  ;;  %v651_v35 = vld [vmem:[#allocation5 + $0x8] sm:$0xff]   ;;  %v653_v40 = vld [vmem:[#allocation5 + $0x50] sm:$0xff]  }
  0x2c   :  { %v130_v20 = vsel %vm55_vm1, 0.0, %v126_v10  ;;  %v618_v22 = vpack.i.bf16 %v58_v18, %v60_v15  ;;  %vm61_vm2 = vcmask 1040384   ;;  %v628_v24 = vpack.i.bf16 %v812_v8, %v805_v3  ;;  %578 = vmatpush3.bf16.msra.mxu0 %v648_v30  ;;  %v654_v42 = vld [vmem:[#allocation5 + $0x10] sm:$0xff]   ;;  %v649_v45 = vld [vmem:[#allocation5 + $0xa0] sm:$0xff]   ;;  %v656_v48 = vld [vmem:[#allocation5 + $0x58] sm:$0xff]  }
  0x2d   :  { %624 = vrot.lane.b32.xlu1 %v623_v17, %s747_s0  ;;  %v633_v26 = vpack.i.bf16 %v128_v19, %v130_v20  ;;  %v145_v27 = vsel %vm75_vm0, %v143_v16, %v144_v23  ;;  %v147_v28 = vsel %vm75_vm0, %v144_v23, 0.0  ;;  %477 = vmatpush1.bf16.msra.mxu1 %v644_v21  ;;  %v62_v31 = vrot.slane %v801_v1, 7  ;;  %v657_v51 = vld [vmem:[#allocation5 + $0x18] sm:$0xff]   ;;  %v659_v53 = vld [vmem:[#allocation5 + $0x60] sm:$0xff]   ;;  %v652_v55 = vld [vmem:[#allocation5 + $0xa8] sm:$0xff]  }
  0x2e   :  { %619 = vrot.lane.b32.xlu0 %v618_v22, %s747_s0  ;;  %478 = vmatprep.subr.bf16.mxu1 %v749_v0  ;;  %v63_v32 = vrot.slane %v803_v2, 7  ;;  %vm81_vm3 = vcmask 1044480   ;;  %v638_v33 = vpack.i.bf16 %v147_v28, %v145_v27  ;;  %vm48_vm4 = vcmask 1042432   ;;  %v660_v58 = vld [vmem:[#allocation5 + $0x20] sm:$0xff]   ;;  %v662_v59 = vld [vmem:[#allocation5 + $0x68] sm:$0xff]   ;;  %v655_v62 = vld [vmem:[#allocation5 + $0xb0] sm:$0xff]  }
  0x2f   :  { %v82_v37 = vrot.slane %v801_v1, 3  ;;  %579 = vmatprep.subr.bf16.mxu0 %v650_v34  ;;  %v83_v39 = vrot.slane %v803_v2, 3  ;;  %v49_v41 = vrot.slane %v801_v1, 5  ;;  %v50_v47 = vrot.slane %v803_v2, 5  ;;  %v663_v4 = vld [vmem:[#allocation5 + $0x28] sm:$0xff]   ;;  %v665_v7 = vld [vmem:[#allocation5 + $0x70] sm:$0xff]  }
  0x30   :  { %v841_v36 = vsel %vm61_vm2, %v62_v31, %v63_v32  ;;  %580 = vmatpush3.bf16.msra.mxu0 %v651_v35  ;;  %vm108_vm5 = vcmask 523264   ;;  %vm68_vm6 = vcmask 1046528   ;;  %v69_v50 = vrot.slane %v801_v1, 1  ;;  %v658_v10 = vld [vmem:[#allocation5 + $0xb8] sm:$0xff]   ;;  %v666_v14 = vld [vmem:[#allocation5 + $0x30] sm:$0xff]   ;;  %v661_v18 = vld [vmem:[#allocation5 + $0xc0] sm:$0xff]  }
  0x31   :  { %629 = vrot.lane.b32.xlu1 %v628_v24, %s747_s0  ;;  %479 = vmatpush1.bf16.msra.mxu1 %v645_v25  ;;  %v84_v43 = vsel %vm81_vm3, %v82_v37, %v83_v39  ;;  %v87_v44 = vsel %vm81_vm3, %v83_v39, 0.0  ;;  %v856_v49 = vsel %vm48_vm4, %v49_v41, %v50_v47  ;;  %v70_v52 = vrot.slane %v803_v2, 1  ;;  %v668_v17 = vld [vmem:[#allocation5 + $0x78] sm:$0xff]   ;;  %v664_v21 = vld [vmem:[#allocation5 + $0xc8] sm:$0xff]   ;;  %v667_v22 = vld [vmem:[#allocation5 + $0xd0] sm:$0xff]  }
  0x32   :  { %634 = vrot.lane.b32.xlu0 %v633_v26, %s747_s0  ;;  %480 = vmatprep.subr.bf16.mxu1 %v749_v0  ;;  %v183_v46 = vpack.c.bf16 %v87_v44, %v84_v43  ;;  %v131_v54 = vrot.slane %v805_v3, 7  ;;  %v132_v57 = vrot.slane %v812_v8, 7  ;;  %v120_v61 = vrot.slane %v805_v3, 5  ;;  %v669_v20 = vld [vmem:[#allocation5 + $0x38] sm:$0xff]  }
  0x33   :  { %581 = vmatprep.subr.bf16.mxu0 %v653_v40  ;;  %v864_v56 = vsel %vm68_vm6, %v69_v50, %v70_v52  ;;  %v121_v63 = vrot.slane %v812_v8, 5  ;;  %v148_v6 = vrot.slane %v805_v3, 3  ;;  %v149_v9 = vrot.slane %v812_v8, 3 }
  0x34   :  { %575 = vmatprep.mubr.msk.bf16.mxu1 %vm108_vm5, %v183_v46  ;;  %582 = vmatpush3.bf16.msra.mxu0 %v654_v42  ;;  %v871_v60 = vsel %vm61_vm2, %v131_v54, %v132_v57  ;;  %v137_v11 = vrot.slane %v805_v3, 1  ;;  %v138_v16 = vrot.slane %v812_v8, 1  ;;  %v670_v8 = vld [vmem:[#allocation5 + $0xd8] sm:$0xff]   ;;  %v67_v24 = vsel %vm61_vm2, 0.0, %v62_v31 }
  0x35   :  { %639 = vrot.lane.b32.xlu1 %v638_v33, %s747_s0  ;;  %481 = vmatpush1.bf16.msra.mxu1 %v646_v38  ;;  %v879_v5 = vsel %vm48_vm4, %v120_v61, %v121_v63  ;;  %v150_v12 = vsel %vm81_vm3, %v148_v6, %v149_v9  ;;  %v153_v13 = vsel %vm81_vm3, %v149_v9, 0.0  ;;  %v74_v30 = vsel %vm68_vm6, %v70_v52, 0.0 }
  0x36   :  { %482 = vmatprep.subr.bf16.mxu1 %v749_v0  ;;  %583 = vmatprep.subr.bf16.mxu0 %v656_v48  ;;  %v187_v15 = vpack.c.bf16 %v153_v13, %v150_v12  ;;  %v139_v19 = vsel %vm68_vm6, %v137_v11, %v138_v16  ;;  %v54_v31 = vsel %vm48_vm4, 0.0, %v49_v41  ;;  %v136_v1 = vsel %vm61_vm2, 0.0, %v131_v54 }
  0x37   :  { %v125_v46 = vsel %vm48_vm4, 0.0, %v120_v61  ;;  %v142_v54 = vsel %vm68_vm6, %v138_v16, 0.0 }
  0x38   :  { %584 = vmatpush3.bf16.msra.mxu0 %v657_v51 }
  0x39   :  { %483 = vmatpush1.bf16.msra.mxu1 %v649_v45  ;;  %585 = vmatprep.subr.bf16.mxu0 %v659_v53 }
  0x3a   :  { %484 = vmatprep.subr.bf16.mxu1 %v749_v0 }
  0x3c   :  { %586 = vmatpush3.bf16.msra.mxu0 %v660_v58 }
  0x3d   :  { %485 = vmatpush1.bf16.msra.mxu1 %v652_v55  ;;  %587 = vmatprep.subr.bf16.mxu0 %v662_v59 }
  0x3e   :  { %486 = vmatprep.subr.bf16.mxu1 %v749_v0 }
  0x40   :  { %588 = vmatpush3.bf16.msra.mxu0 %v663_v4  ;;  %v546_v4 = vld [vmem:[%s947_s2] ss:$0 sm:$0xff]  ;;  %s750_s2 = smov [#allocation7]  }
  0x41   :  { %487 = vmatpush1.bf16.msra.mxu1 %v655_v62  ;;  %589 = vmatprep.subr.bf16.mxu0 %v665_v7  ;;  %s533_s13 = sshll.u32 %s750_s2, 4  ;;  %s534_s13 = int_to_ptr.vmem [resolvable:$true] %s533_s13 }
  0x42   :  { %488 = vmatprep.subr.bf16.mxu1 %v749_v0  ;;  %s715_s14 = scalar_lea.vmem %s534_s13, 512  ;;  %p720_p3 = scmp.lt.s32.totalorder %s534_s13, %s534_s13 }
  0x43   :  { %p716_p2 = scmp.ne.s32.totalorder %s534_s13, %s715_s14  ;;  %p721_p4 = scmp.lt.s32.totalorder %s715_s14, %s715_s14 }
  0x44   :  { %590 = vmatpush3.bf16.msra.mxu0 %v666_v14 }
  0x45   :  { %489 = vmatpush1.bf16.msra.mxu1 %v658_v10  ;;  %591 = vmatprep.subr.bf16.mxu0 %v668_v17  ;;  %p722_p5 = por %p721_p4, %p720_p3 }
  0x46   :  { %490 = vmatprep.subr.bf16.mxu1 %v749_v0 }
  0x47   :  { %p723_p6 = pnand %p722_p5, %p716_p2 }
  0x48   :  { %592 = vmatpush3.bf16.msra.mxu0 %v669_v20 }
  0x49   :  { %491 = vmatpush1.bf16.msra.mxu1 %v661_v18 }
  0x4a   :  { %492 = vmatprep.subr.bf16.mxu1 %v749_v0 }
  0x4d   :  { %493 = vmatpush1.bf16.msra.mxu1 %v664_v21 }
  0x4e   :  { %494 = vmatprep.subr.bf16.mxu1 %v749_v0 }
  0x51   :  { %495 = vmatpush1.bf16.msra.mxu1 %v667_v22 }
  0x52   :  { %496 = vmatprep.subr.bf16.mxu1 %v749_v0 }
  0x55   :  { %497 = vmatpush1.bf16.msra.mxu1 %v670_v8 }
  0x9c   :  { %v615_v23 = vpop.permute.xlu0 %614 }
  0x9d   :  { %v617_v25 = vunpack.i.h.bf16 %v615_v23  ;;  %v616_v26 = vunpack.i.l.bf16 %v615_v23 }
  0x9f   :  { %v625_v27 = vpop.permute.xlu1 %624  ;;  %v111_v28 = vsel %vm108_vm5, %v67_v24, %v616_v26  ;;  %v112_v29 = vsel %vm108_vm5, %v841_v36, %v617_v25 }
  0xa0   :  { %v627_v32 = vunpack.i.h.bf16 %v625_v27  ;;  %v626_v0 = vunpack.i.l.bf16 %v625_v27  ;;  %v620_v33 = vpop.permute.xlu0 %619  ;;  %v181_v34 = vpack.c.bf16 %v112_v29, %v111_v28 }
  0xa1   :  { %v622_v35 = vunpack.i.h.bf16 %v620_v33  ;;  %v621_v37 = vunpack.i.l.bf16 %v620_v33 }
  0xa2   :  { %457 = vmatprep.mubr.bf16.mxu0 %v181_v34  ;;  %v113_v38 = vsel %vm108_vm5, %v864_v56, %v626_v0  ;;  %v114_v36 = vsel %vm108_vm5, %v74_v30, %v627_v32 }
  0xa3   :  { %v630_v39 = vpop.permute.xlu1 %629  ;;  %v109_v2 = vsel %vm108_vm5, %v54_v31, %v621_v37  ;;  %v110_v40 = vsel %vm108_vm5, %v856_v49, %v622_v35  ;;  %v182_v42 = vpack.c.bf16 %v114_v36, %v113_v38 }
  0xa4   :  { %v632_v41 = vunpack.i.h.bf16 %v630_v39  ;;  %v631_v43 = vunpack.i.l.bf16 %v630_v39  ;;  %v180_v44 = vpack.c.bf16 %v110_v40, %v109_v2  ;;  %v635_v45 = vpop.permute.xlu0 %634 }
  0xa5   :  { %507 = vmatmul.mubr.bf16.vlgmr.msra.gmra.mrb[0].mxu1 %v182_v42  ;;  %v637_v47 = vunpack.i.h.bf16 %v635_v45  ;;  %v636_v48 = vunpack.i.l.bf16 %v635_v45 }
  0xa6   :  { %458 = vmatmul.mubr.bf16.vlgmr.msra.gmra.mrb[0].mxu0 %v180_v44  ;;  %v176_v50 = vsel %vm108_vm5, %v136_v1, %v631_v43  ;;  %v177_v49 = vsel %vm108_vm5, %v871_v60, %v632_v41  ;;  %576 = vmatprep.mubr.msk.bf16.mxu1 %vm108_vm5, %v187_v15 }
  0xa7   :  { %v640_v51 = vpop.permute.xlu1 %639  ;;  %v185_v52 = vpack.c.bf16 %v177_v49, %v176_v50  ;;  %v174_v53 = vsel %vm108_vm5, %v125_v46, %v636_v48  ;;  %v175_v3 = vsel %vm108_vm5, %v879_v5, %v637_v47 }
  0xa8   :  { %v642_v55 = vunpack.i.h.bf16 %v640_v51  ;;  %v641_v56 = vunpack.i.l.bf16 %v640_v51  ;;  %v184_v57 = vpack.c.bf16 %v175_v3, %v174_v53 }
  0xa9   :  { %465 = vmatprep.mubr.bf16.mxu0 %v185_v52 }
  0xaa   :  { %v178_v58 = vsel %vm108_vm5, %v139_v19, %v641_v56  ;;  %v179_v59 = vsel %vm108_vm5, %v142_v54, %v642_v55 }
  0xab   :  { %v186_v60 = vpack.c.bf16 %v179_v59, %v178_v58 }
  0xad   :  { %515 = vmatmul.mubr.bf16.gmra.mrb[4].mxu1 %v186_v60 }
  0xae   :  { %466 = vmatmul.mubr.bf16.gmra.mrb[4].mxu0 %v184_v57 }
 0x178   :  { %v508_v61 = vpop.f32.mrb[0].mxu1 }
 0x179   :  { %v593_v62 = vpop.f32.mrb[0].mxu0  ;;  %v510_v63 = vpop.f32.mrb[1].mxu1 }
 0x17a   :  { %v594_v5 = vpop.f32.mrb[1].mxu0  ;;  %v511_v6 = vpop.f32.mrb[2].mxu1 }
 0x17b   :  { %v595_v7 = vadd.f32 %v594_v5, %v593_v62  ;;  %v596_v9 = vpop.f32.mrb[2].mxu0  ;;  %v513_v10 = vpop.f32.mrb[3].mxu1 }
 0x17c   :  { %v597_v11 = vpop.f32.mrb[3].mxu0 }
 0x17d   :  { %v460_v12 = vadd.f32 %v595_v7, %v546_v4  ;;  %v598_v13 = vadd.f32 %v597_v11, %v596_v9 }
 0x17f   :  { %v509_v14 = vadd.f32 %v508_v61, %v460_v12  ;;  %v463_v15 = vadd.f32 %v598_v13, %v546_v4 }
 0x180   :  { %v516_v16 = vpop.f32.mrb[4].mxu1 }
 0x181   :  { %523 = vst [vmem:[#allocation7] sm:$0xff] %v509_v14  ;;  %v512_v17 = vadd.f32 %v511_v6, %v463_v15  ;;  %v599_v18 = vpop.f32.mrb[4].mxu0  ;;  %v518_v19 = vpop.f32.mrb[5].mxu1 }
 0x182   :  { %v600_v20 = vpop.f32.mrb[5].mxu0  ;;  %v519_v21 = vpop.f32.mrb[6].mxu1 }
 0x183   :  { %524 = vst [vmem:[#allocation7 + $0x8] sm:$0xff] %v512_v17  ;;  %v601_v22 = vadd.f32 %v600_v20, %v599_v18  ;;  %v602_v8 = vpop.f32.mrb[6].mxu0  ;;  %v521_v23 = vpop.f32.mrb[7].mxu1 }
 0x184   :  { %v603_v24 = vpop.f32.mrb[7].mxu0 }
 0x185   :  { %v468_v25 = vadd.f32 %v601_v22, %v546_v4  ;;  %v604_v26 = vadd.f32 %v603_v24, %v602_v8 }
 0x187   :  { %v517_v27 = vadd.f32 %v516_v16, %v468_v25  ;;  %v471_v28 = vadd.f32 %v604_v26, %v546_v4 }
 0x189   :  { %526 = vst [vmem:[#allocation7 + $0x10] sm:$0xff] %v517_v27  ;;  %v520_v29 = vadd.f32 %v519_v21, %v471_v28 }
 0x18b   :  { %527 = vst [vmem:[#allocation7 + $0x18] sm:$0xff] %v520_v29 }
 0x18c   :  { %726 = shalt.err (!%p723_p6)
}
 0x18d   :  { %s727_s17 = scalar_lea.hbm %s948_s3, 512 }
 0x18e   :  { %p728_p7 = scmp.ne.s32.totalorder %s948_s3, %s727_s17  ;;  %p731_p8 = scmp.lt.u32.totalorder %s727_s17, %s948_s3 }
 0x190   :  { %p733_p9 = pnand %p731_p8, %p728_p7 }
 0x192   :  { %736 = shalt.err (!%p733_p9)
}
 0x193   :  { %539 = dma.vmem_to_hbm [thread:$0]  %s534_s13, 512, %s948_s3, [#allocation4], %s744_s22, %s744_s22, %s745_s23  }
 0x194   :  { %741 = dma.done.wait [#allocation4], 512  }
 0x195   :  { %742 = vsyncadd [#allocation4], 4294966784 }
 0x196   :  { %543 = vsyncpa [#allocation3], 1 }
 0x197   :  { %544 = vsyncpa [#allocation6], 1 }
 0x198   :  { %545 = vsyncpa [#allocation4], 1 }

</bundles_post_ra>
